<compile_context>
chip_gen: v7x
topology: tpu7x:2x2x1
jax: 0.10.0
libtpu: 0.0.40
codegen_flags: <defaults>
</compile_context>

<pallas_src>
import functools

import jax
import jax.numpy as jnp
from jax.experimental import pallas as pl
from jax.experimental.pallas import tpu as pltpu


def _prd_kernel(x_ref, ch_ref, out_ref, *, cdim, krows, cols):
    """x_ref: (bt, C, R*Cols); ch_ref: (1, C, 1); out_ref: (1, 1, (K-1)*Cols) partial."""
    x = x_ref[...].astype(jnp.float32)                    # (bt, C, RC)
    ch = ch_ref[...]                                      # (1, C, 1), values 0..C-1
    valid = ch < jnp.float32(cdim - 1)                    # exclude last channel

    # Softmax over the first C-1 channels, never materialized:
    #   pos = sum_c(e * c) / sum_c(e),  e = exp(x - m)
    # m = max over the VALID channels only (masked max): NaN-safe and identical to
    # the reference softmax shift; the constant cancels in the ratio.
    m = jnp.max(jnp.where(valid, x, -jnp.inf), axis=1, keepdims=True)   # (bt, 1, RC)
    e = jnp.where(valid, jnp.exp(x - m), 0.0)             # (bt, C, RC)
    se = jnp.sum(e, axis=1, keepdims=True)                # (bt, 1, RC)
    wsum = jnp.sum(e * ch, axis=1, keepdims=True)         # (bt, 1, RC)
    pos = wsum / se                                       # (bt, 1, RC), exact divide

    # diff[i] - diff[i+1] = pos[i] - 2*pos[i+1] + pos[i+2], i = 0..K-2.
    # Rows are contiguous chunks of `cols` lanes in the flattened (R*Cols) axis.
    a = pos[..., 0 : (krows - 1) * cols]
    b = pos[..., cols : krows * cols]
    c = pos[..., 2 * cols : (krows + 1) * cols]
    d2 = a - 2.0 * b + c                                  # (bt, 1, (K-1)*Cols)

    # Lane-dense partial: reduce only over the batch axis (plain vreg adds, no
    # cross-lane XLU reduction); the wrapper does the final tiny sum + normalize.
    out_ref[...] = jnp.sum(jnp.abs(d2), axis=0, keepdims=True)


# Scoped-VMEM limit raised explicitly: well within physical VMEM on v5e/v6e
# (128 MiB) and v7x (64 MiB); above v5e's 16 MiB default so large tiles still fit.
_VMEM_LIMIT_BYTES = 32 * 1024 * 1024
_VMEM_TILE_BUDGET = 24 * 1024 * 1024     # headroom below the scoped limit


def _pick_batch_tile(n, dim, rc, in_itemsize):
    """Largest batch tile whose *live* VMEM footprint fits the budget.

    Live footprint per sample ≈ 2x double-buffered input tile (BlockSpec pipelining)
    + ~3x full-size f32 temporaries inside the kernel (f32 upcast of x, e, e*ch).
    """
    per_sample_in = dim * rc * in_itemsize
    per_sample_f32 = dim * rc * 4
    live_per_sample = 2 * per_sample_in + 3 * per_sample_f32
    bt = max(1, _VMEM_TILE_BUDGET // live_per_sample)
    if n >= 2:
        # Keep >= 2 grid steps so dimension_semantics=("parallel",) can shard the
        # batch-tile axis across both v7x TensorCores (no effect on v5e/v6e).
        bt = min(bt, (n + 1) // 2)
    return min(bt, n)


@jax.jit
def parsing_relation_dis(x):
    """Pallas implementation of ParsingRelationDis.forward ('orig_sim_loss' branch)."""
    n, dim, num_rows, num_cols = x.shape
    K = num_rows // 2
    assert K >= 2, "need at least 2 diff terms (num_rows >= 4)"
    rc = num_rows * num_cols   # lane axis; ideally a multiple of 128 (256 here)

    # Free (contiguous) reshape: flatten (R, Cols) into the trailing lane axis.
    x3 = x.reshape(n, dim, rc)
    # Tiny channel-index / embedding array, built once (no per-iteration iota).
    ch = jnp.arange(dim, dtype=jnp.float32).reshape(1, dim, 1)

    bt = _pick_batch_tile(n, dim, rc, x.dtype.itemsize)
    num_tiles = pl.cdiv(n, bt)
    n_pad = num_tiles * bt
    if n_pad != n:
        # Zero-padded samples yield a row-constant pos -> d2 == 0 -> contribute 0.
        x3 = jnp.pad(x3, ((0, n_pad - n), (0, 0), (0, 0)))

    L = (K - 1) * num_cols
    kernel = functools.partial(_prd_kernel, cdim=dim, krows=K, cols=num_cols)
    partials = pl.pallas_call(
        kernel,
        out_shape=jax.ShapeDtypeStruct((num_tiles, 1, L), jnp.float32),
        grid=(num_tiles,),
        in_specs=[
            pl.BlockSpec((bt, dim, rc), lambda i: (i, 0, 0)),
            pl.BlockSpec((1, dim, 1), lambda i: (0, 0, 0)),
        ],
        out_specs=pl.BlockSpec((1, 1, L), lambda i: (i, 0, 0)),
        compiler_params=pltpu.CompilerParams(
            dimension_semantics=("parallel",),
            vmem_limit_bytes=_VMEM_LIMIT_BYTES,
        ),
        cost_estimate=pl.CostEstimate(
            flops=5 * n_pad * dim * rc,
            transcendentals=n_pad * dim * rc,
            bytes_accessed=n_pad * dim * rc * x.dtype.itemsize + num_tiles * L * 4,
        ),
    )(x3, ch)

    denom = jnp.float32((K - 1) * n * num_cols)
    return jnp.sum(partials) / denom


def _reference(x):
    """Pure-JAX reference mirroring the PyTorch forward (orig_sim_loss branch)."""
    n, dim, num_rows, num_cols = x.shape
    soft = jax.nn.softmax(x[:, : dim - 1, :, :], axis=1)
    emb = jnp.arange(dim - 1, dtype=jnp.float32).reshape(1, -1, 1, 1)
    pos = jnp.sum(soft * emb, axis=1)                     # (N, R, Cols)
    K = num_rows // 2
    diffs = [pos[:, i, :] - pos[:, i + 1, :] for i in range(K)]
    loss = jnp.float32(0.0)
    for i in range(K - 1):
        loss = loss + jnp.mean(jnp.abs(diffs[i] - diffs[i + 1]))
    return loss / (K - 1)


if __name__ == "__main__":
    key = jax.random.PRNGKey(0)
    # (batch, dim, num_rows, num_cols) — small shapes consistent with the module
    x = jax.random.normal(key, (2, 4, 16, 16), dtype=jnp.float32)

    loss = jax.block_until_ready(parsing_relation_dis(x))
    ref = jax.block_until_ready(_reference(x))
    assert jnp.allclose(loss, ref, rtol=1e-5, atol=1e-5), (loss, ref)

    print("KERNEL_OK")
</pallas_src>

<mosaic_0001>
module attributes {stable_mosaic.version = 11 : i64} {
  func.func @_prd_kernel(%arg0: i32, %arg1: memref<1x4x256xf32, #tpu.memory_space<vmem>>, %arg2: memref<1x4x1xf32, #tpu.memory_space<vmem>>, %arg3: memref<1x1x112xf32, #tpu.memory_space<vmem>>) attributes {dimension_semantics = [#tpu.dimension_semantics<parallel>], iteration_bounds = array<i64: 2>, scalar_prefetch = 0 : i64, scratch_operands = 0 : i64, tpu.core_type = #tpu.core_type<tc>, window_params = [{transform_indices = @transform_0, window_bounds = array<i64: 1, 4, 256>}, {pipeline_mode = #tpu.pipeline_mode<synchronous>, transform_indices = @transform_1, window_bounds = array<i64: 1, 4, 1>}, {transform_indices = @transform_2, window_bounds = array<i64: 1, 1, 112>}]} {
    %c0 = arith.constant 0 : index
    %c0_0 = arith.constant 0 : index
    %c0_1 = arith.constant 0 : index
    %0 = vector.load %arg1[%c0, %c0_0, %c0_1] : memref<1x4x256xf32, #tpu.memory_space<vmem>>, vector<1x4x256xf32>
    %c0_2 = arith.constant 0 : index
    %c0_3 = arith.constant 0 : index
    %c0_4 = arith.constant 0 : index
    %1 = vector.load %arg2[%c0_2, %c0_3, %c0_4] : memref<1x4x1xf32, #tpu.memory_space<vmem>>, vector<1x4x1xf32>
    %cst = arith.constant 3.000000e+00 : f32
    %2 = vector.broadcast %cst : f32 to vector<1x4x1xf32>
    %3 = arith.cmpf olt, %1, %2 : vector<1x4x1xf32>
    %cst_5 = arith.constant 0xFF800000 : f32
    %4 = vector.shape_cast %3 : vector<1x4x1xi1> to vector<1x4x1xi1>
    %5 = vector.broadcast %4 : vector<1x4x1xi1> to vector<1x4x256xi1>
    %6 = vector.broadcast %cst_5 : f32 to vector<1x4x256xf32>
    %7 = arith.select %5, %0, %6 : vector<1x4x256xi1>, vector<1x4x256xf32>
    %cst_6 = arith.constant dense<0xFF800000> : vector<1x256xf32>
    %8 = vector.multi_reduction <maximumf>, %7, %cst_6 [1] : vector<1x4x256xf32> to vector<1x256xf32>
    %9 = vector.shape_cast %8 : vector<1x256xf32> to vector<1x1x256xf32>
    %10 = vector.broadcast %9 : vector<1x1x256xf32> to vector<1x4x256xf32>
    %11 = arith.subf %0, %10 : vector<1x4x256xf32>
    %12 = math.exp %11 : vector<1x4x256xf32>
    %cst_7 = arith.constant 0.000000e+00 : f32
    %13 = vector.shape_cast %3 : vector<1x4x1xi1> to vector<1x4x1xi1>
    %14 = vector.broadcast %13 : vector<1x4x1xi1> to vector<1x4x256xi1>
    %15 = vector.broadcast %cst_7 : f32 to vector<1x4x256xf32>
    %16 = arith.select %14, %12, %15 : vector<1x4x256xi1>, vector<1x4x256xf32>
    %cst_8 = arith.constant dense<0.000000e+00> : vector<1x256xf32>
    %17 = vector.multi_reduction <add>, %16, %cst_8 [1] : vector<1x4x256xf32> to vector<1x256xf32>
    %18 = vector.shape_cast %17 : vector<1x256xf32> to vector<1x1x256xf32>
    %19 = vector.broadcast %1 : vector<1x4x1xf32> to vector<1x4x256xf32>
    %20 = arith.mulf %16, %19 : vector<1x4x256xf32>
    %cst_9 = arith.constant dense<0.000000e+00> : vector<1x256xf32>
    %21 = vector.multi_reduction <add>, %20, %cst_9 [1] : vector<1x4x256xf32> to vector<1x256xf32>
    %22 = vector.shape_cast %21 : vector<1x256xf32> to vector<1x1x256xf32>
    %23 = arith.divf %22, %18 : vector<1x1x256xf32>
    %24 = vector.extract_strided_slice %23 {offsets = [0, 0, 0], sizes = [1, 1, 112], strides = [1, 1, 1]} : vector<1x1x256xf32> to vector<1x1x112xf32>
    %25 = vector.extract_strided_slice %23 {offsets = [0, 0, 16], sizes = [1, 1, 112], strides = [1, 1, 1]} : vector<1x1x256xf32> to vector<1x1x112xf32>
    %26 = vector.extract_strided_slice %23 {offsets = [0, 0, 32], sizes = [1, 1, 112], strides = [1, 1, 1]} : vector<1x1x256xf32> to vector<1x1x112xf32>
    %cst_10 = arith.constant 2.000000e+00 : f32
    %27 = vector.broadcast %cst_10 : f32 to vector<1x1x112xf32>
    %28 = arith.mulf %27, %25 : vector<1x1x112xf32>
    %29 = arith.subf %24, %28 : vector<1x1x112xf32>
    %30 = arith.addf %29, %26 : vector<1x1x112xf32>
    %31 = math.absf %30 : vector<1x1x112xf32>
    %cst_11 = arith.constant dense<0.000000e+00> : vector<1x112xf32>
    %32 = vector.multi_reduction <add>, %31, %cst_11 [0] : vector<1x1x112xf32> to vector<1x112xf32>
    %33 = vector.shape_cast %32 : vector<1x112xf32> to vector<1x1x112xf32>
    %c0_12 = arith.constant 0 : index
    %c0_13 = arith.constant 0 : index
    %c0_14 = arith.constant 0 : index
    %34 = vector.load %arg3[%c0_12, %c0_13, %c0_14] : memref<1x1x112xf32, #tpu.memory_space<vmem>>, vector<1x1x112xf32>
    tpu.vector_store %arg3[%c0_12, %c0_13, %c0_14], %33 {strides = array<i32>} : memref<1x1x112xf32, #tpu.memory_space<vmem>>, vector<1x1x112xf32>,
    return
  }
  func.func @transform_0(%arg0: i32) -> (i32, i32, i32) {
    %c0_i32 = arith.constant 0 : i32
    %c0_i32_0 = arith.constant 0 : i32
    %c0_i32_1 = arith.constant 0 : i32
    return %arg0, %c0_i32, %c0_i32_0 : i32, i32, i32
  }
  func.func @transform_1(%arg0: i32) -> (i32, i32, i32) {
    %c0_i32 = arith.constant 0 : i32
    %c0_i32_0 = arith.constant 0 : i32
    %c0_i32_1 = arith.constant 0 : i32
    %c0_i32_2 = arith.constant 0 : i32
    return %c0_i32, %c0_i32_0, %c0_i32_1 : i32, i32, i32
  }
  func.func @transform_2(%arg0: i32) -> (i32, i32, i32) {
    %c0_i32 = arith.constant 0 : i32
    %c0_i32_0 = arith.constant 0 : i32
    %c0_i32_1 = arith.constant 0 : i32
    return %arg0, %c0_i32, %c0_i32_0 : i32, i32, i32
  }
}

</mosaic_0001>

<bundles_post_ra>
// kernel: parsing_relation_dis.1
= control target key start
LH: loop header
LB: loop body
LE: loop exit
PB: predicated region body
PF: predicated region fallthrough
CT: control target
= control target key end

     0   :  { %s341_s9 = smov 0   ;;  %s375_s0 = inlined_call_operand.vmem [shape: f32[2,4,256], index: 0, kind: input, shape index: {}]   ;;  %s376_s1 = inlined_call_operand.vmem [shape: f32[1,4,1], index: 1, kind: input, shape index: {}]   ;;  %s377_s2 = inlined_call_operand.vmem [shape: f32[2,1,112], index: 2, kind: output, shape index: {}]  }
   0x1 LB: > { %s286_s10 = sadd.s32 4294967295, %s321_s9   ;;  %p290_p0 = scmp.ge.s32.totalorder %s321_s9, 1  ;;  %s321_s9 = sphi %s341_s9, %s12_s9  }
   0x2   : > { %p112_p1 = scmp.lt.s32.totalorder %s321_s9, 3 }
   0x4   : > { %p113_p2 = pnand %p290_p0, %p112_p1 }
   0x5   : > { %v141_v0 = vld [vmem:[%s376_s1] sm:$0xf] (!%p113_p2)  ;;  %v323_v1 = vmov (!%p113_p2), 0   ;;  %p132_p3 = scmp.lt.s32.totalorder (!%p113_p2), %s286_s10, 1  ;;  %vm153_vm1 = vcmask (!%p113_p2), 1043456   ;;  %s324_s17 = smov (!%p113_p2), 112  }
   0x6   : > { %116 = sbr.rel (%p113_p2) target bundleno = 322 (0x142), region = 28  ;;  %307 = vset.pattern.permute.xlu0 (!%p113_p2), %v323_v1  ;;  %vm142_vm0 = vcmp.lt.f32.partialorder (!%p113_p2), %v141_v0, 3.0  ;;  %s325_s18 = smov (!%p113_p2), 96   ;;  %vm231_vm3 = vcmask (!%p113_p2), 785408   ;;  %vm237_vm4 = vcmask (!%p113_p2), 909312  }
   0x7   : > { %v143_v2 = vsel (!%p113_p2), %vm142_vm0, 1, %v323_v1 }
   0x8   : > { %145 = vperm.xlu0 (!%p113_p2), %307, %v143_v2  }
   0xc   : > { %196 = vperm.xlu0 (!%p113_p2), %307, %v141_v0  }
   0xd   : > { %s379_s10 = smov (!%p132_p3, %s286_s10), 1 }
   0xe   : > { %s295_s13 = sshll.u32 %s379_s10, 3  ;;  %s139_s21 = scalar_lea.vmem %s377_s2, %s379_s10 }
   0xf   : > { %s136_s16 = scalar_lea.vmem %s375_s0, %s295_s13 }
  0x10   : > { %v140_v3 = vld [vmem:[%s136_s16] sm:$0xff] }
  0x11   : > { %v149_v4 = vcombine.high %v140_v3, %v140_v3 }
  0x87   : > { %v146_v5 = vpop.permute.xlu0 %145 }
  0x88   : > { %vm147_vm2 = vcmp.eq.s32.totalorder %v146_v5, 1 }
  0x89   : > { %v151_v6 = vsel %vm147_vm2, %v140_v3, -inf  ;;  %v152_v7 = vsel %vm147_vm2, %v149_v4, -inf }
  0x8a   : > { %v154_v8 = vsel %vm153_vm1, %v151_v6, -inf  ;;  %v161_v9 = vsel %vm153_vm1, %v152_v7, -inf }
  0x8b   : > { %v155_v10 = vrot.slane %v154_v8, 4  ;;  %v162_v11 = vrot.slane %v161_v9, 4  ;;  %v197_v26 = vpop.permute.xlu0 %196 }
  0x8d   : > { %v156_v12 = vmax.f32 %v154_v8, %v155_v10  ;;  %v163_v13 = vmax.f32 %v161_v9, %v162_v11 }
  0x8f   : > { %v157_v14 = vrot.slane %v156_v12, 2  ;;  %v164_v15 = vrot.slane %v163_v13, 2 }
  0x91   : > { %v158_v16 = vmax.f32 %v156_v12, %v157_v14  ;;  %v165_v17 = vmax.f32 %v163_v13, %v164_v15 }
  0x93   : > { %v159_v18 = vrot.slane %v158_v16, 1  ;;  %v166_v19 = vrot.slane %v165_v17, 1 }
  0x95   : > { %v160_v20 = vmax.f32 %v158_v16, %v159_v18  ;;  %v167_v21 = vmax.f32 %v165_v17, %v166_v19 }
  0x97   : > { %v170_v22 = vcombine.low %v160_v20, %v167_v21 }
  0x99   : > { %v172_v23 = vsub.f32 %v140_v3, %v170_v22 }
  0x9b   : > { %v173_v24 = vmul.f32 1.442695, %v172_v23 }
  0x9d   : > { %309 = vpow2.f32 %v173_v24 }
  0xa7   : > { %v310_v25 = vpop.eup %309 }
  0xa8   : > { %v176_v27 = vcombine.high %v310_v25, %v310_v25  ;;  %v178_v28 = vsel %vm147_vm2, %v310_v25, 0.0 }
  0xa9   : > { %v180_v29 = vsel %vm153_vm1, %v178_v28, 0.0  ;;  %v199_v30 = vmul.f32 %v197_v26, %v178_v28 }
  0xaa   : > { %v179_v31 = vsel %vm147_vm2, %v176_v27, 0.0  ;;  %v181_v32 = vrot.slane %v180_v29, 4 }
  0xab   : > { %v187_v33 = vsel %vm153_vm1, %v179_v31, 0.0  ;;  %v200_v34 = vmul.f32 %v197_v26, %v179_v31  ;;  %v201_v35 = vsel %vm153_vm1, %v199_v30, 0.0 }
  0xac   : > { %v182_v36 = vadd.f32 %v181_v32, %v180_v29  ;;  %v188_v37 = vrot.slane %v187_v33, 4  ;;  %v202_v38 = vrot.slane %v201_v35, 4 }
  0xad   : > { %v208_v39 = vsel %vm153_vm1, %v200_v34, 0.0 }
  0xae   : > { %v183_v40 = vrot.slane %v182_v36, 2  ;;  %v189_v41 = vadd.f32 %v188_v37, %v187_v33  ;;  %v209_v42 = vrot.slane %v208_v39, 4  ;;  %v203_v43 = vadd.f32 %v202_v38, %v201_v35 }
  0xb0   : > { %v184_v44 = vadd.f32 %v183_v40, %v182_v36  ;;  %v190_v45 = vrot.slane %v189_v41, 2  ;;  %v210_v46 = vadd.f32 %v209_v42, %v208_v39  ;;  %v204_v49 = vrot.slane %v203_v43, 2 }
  0xb2   : > { %v185_v47 = vrot.slane %v184_v44, 1  ;;  %v191_v48 = vadd.f32 %v190_v45, %v189_v41  ;;  %v211_v52 = vrot.slane %v210_v46, 2  ;;  %v205_v54 = vadd.f32 %v204_v49, %v203_v43 }
  0xb4   : > { %v186_v50 = vadd.f32 %v185_v47, %v184_v44  ;;  %v192_v51 = vrot.slane %v191_v48, 1  ;;  %v212_v55 = vadd.f32 %v211_v52, %v210_v46  ;;  %v206_v56 = vrot.slane %v205_v54, 1 }
  0xb6   : > { %v193_v53 = vadd.f32 %v192_v51, %v191_v48  ;;  %311 = vrcp.f32 %v186_v50  ;;  %v213_v57 = vrot.slane %v212_v55, 1  ;;  %v207_v58 = vadd.f32 %v206_v56, %v205_v54 }
  0xb8   : > { %313 = vrcp.f32 %v193_v53  ;;  %v214_v61 = vadd.f32 %v213_v57, %v212_v55 }
  0xc0   : > { %v312_v59 = vpop.eup %311 }
  0xc1   : > { %v216_v60 = vmul.f32 %v312_v59, %v207_v58 }
  0xc2   : > { %v314_v62 = vpop.eup %313 }
  0xc3   : > { %v219_v63 = vmul.f32 2.0, %v216_v60  ;;  %v218_v0 = vmul.f32 %v314_v62, %v214_v61 }
  0xc5   : > { %221 = vrot.lane.b32.xlu1 %v219_v63, %s324_s17  ;;  %229 = vrot.lane.b32.xlu0 %v218_v0, %s325_s18 }
  0xc9   : > { %227 = vrot.lane.b32.xlu1 %v216_v60, %s325_s18 }
 0x137   : > { %v222_v1 = vpop.permute.xlu1 %221  ;;  %v230_v3 = vpop.permute.xlu0 %229 }
 0x138   : > { %v224_v2 = vsub.f32 %v216_v60, %v222_v1 }
 0x13b   : > { %v228_v4 = vpop.permute.xlu1 %227 }
 0x13c   : > { %v232_v5 = vsel %vm231_vm3, %v228_v4, %v230_v3 }
 0x13d   : > { %v234_v6 = vadd.f32 %v232_v5, %v224_v2 }
 0x13f   : > { %v235_v7 = vand.u32 2147483647, %v234_v6 }
 0x141   : > { %238 = vst.msk [vmem:[%s139_s21] sm:$0x1] %vm237_vm4, %v235_v7 }
 0x142 PF: > { %s12_s9 = sadd.s32 1, %s321_s9  }
 0x143   : > { %p9_p4 = scmp.ge.s32.totalorder %s12_s9, 4  }
 0x145   :  { %11 = sbr.rel (!%p9_p4) target bundleno = 1 (0x1), region = 58 }

</bundles_post_ra>
